<compile_context>
chip_gen: v7x
topology: tpu7x:2x2x1
jax: 0.10.0
libtpu: 0.0.40
codegen_flags: <defaults>
</compile_context>

<pallas_src>
import functools

import jax
import jax.numpy as jnp
from jax.experimental import pallas as pl
from jax.experimental.pallas import tpu as pltpu

M_POS = 1.0
M_NEG = 0.5
GAMMA = 2.0


def _softplus(x):
    # Numerically stable log(1 + exp(x)) in f32.
    return jnp.maximum(x, 0.0) + jnp.log(1.0 + jnp.exp(-jnp.abs(x)))


def _round_up(x, m):
    return ((x + m - 1) // m) * m


def _ranking_loss_kernel(logit_ref, target_ref, partial_ref, tl_acc, mx_acc, *,
                         n_rows, n_cols, tile_n, c_tile, needs_col_mask,
                         compute_dtype):
    i = pl.program_id(0)            # row-tile index ("parallel")
    j = pl.program_id(1)            # class-chunk index ("arbitrary", innermost)
    nj = pl.num_programs(1)

    @pl.when(j == 0)
    def _init():
        tl_acc[...] = jnp.zeros_like(tl_acc)
        mx_acc[...] = jnp.full_like(mx_acc, -jnp.inf)

    # Keep bf16 inputs packed through the whole [T, C] tile on bf16-VPU chips;
    # astype is a no-op when compute_dtype == input dtype.
    logit = logit_ref[...].astype(compute_dtype)      # [T, Ct]
    target = target_ref[...]                          # [T, 1] i32
    t, ct = logit.shape

    col = j * c_tile + jax.lax.broadcasted_iota(jnp.int32, (t, ct), 1)
    tgt_mask = col == target                          # reused for both reductions

    zero = jnp.array(0, compute_dtype)
    neg_inf = jnp.array(-jnp.inf, compute_dtype)

    # logit[row, target[row]] via one-hot row-sum (exact even in bf16: at most
    # one nonzero per row per chunk).
    tl_part = jnp.sum(jnp.where(tgt_mask, logit, zero), axis=1, keepdims=True)

    # Best competing logit == row max excluding the target column (== predF).
    # Padded columns of a partial last C chunk are also masked to -inf.
    if needs_col_mask:
        max_mask = jnp.logical_or(tgt_mask, col >= n_cols)
    else:
        max_mask = tgt_mask
    mx_part = jnp.max(jnp.where(max_mask, neg_inf, logit), axis=1, keepdims=True)

    # Accumulate in f32 (exact: selections of representable values).
    tl_acc[...] = tl_acc[...] + tl_part.astype(jnp.float32)
    mx_acc[...] = jnp.maximum(mx_acc[...], mx_part.astype(jnp.float32))

    @pl.when(j == nj - 1)
    def _finalize():
        target_logit = tl_acc[...]                    # [T, 1] f32
        pred_f = mx_acc[...]                          # [T, 1] f32
        per_row = (_softplus(GAMMA * (M_POS - target_logit))
                   + _softplus(GAMMA * (-M_NEG + pred_f)))
        # Mask rows past the end of the array (partial last row tile). Keep as
        # a where AFTER the -inf-masked max so padding garbage never escapes.
        row = i * tile_n + jax.lax.broadcasted_iota(jnp.int32, (tile_n, 1), 0)
        per_row = jnp.where(row < n_rows, per_row, 0.0)
        partial_ref[0, 0] = jnp.sum(per_row)


def _has_bf16_valu():
    """True on chips with a bf16 VPU (v6e/v7x); False on v5e and older."""
    try:
        kind = jax.devices()[0].device_kind.lower()
    except Exception:
        return True
    for old in ("v2", "v3", "v4", "v5"):
        if old in kind:
            return False
    return True


def _vmem_capacity_bytes():
    try:
        return int(pltpu.get_tpu_info().vmem_capacity_bytes)
    except Exception:
        return 64 << 20   # conservative: v7x per-TC physical VMEM


def _choose_tiles(n, c, itemsize, block_budget=2 << 20):
    """Pick (tile_n, c_tile) so each logit block is ~block_budget of VMEM.

    VMEM footprint is lane-padded (last dim rounds up to 128), so the budget is
    computed on the padded width.  Full-C blocks are preferred (single-pass row
    reductions); C is tiled only when even 8 full-C rows would not fit.
    """
    c_pad = _round_up(c, 128)
    if c_pad * itemsize * 8 <= block_budget:
        c_tile = c
        tile_n = max(8, (block_budget // (c_pad * itemsize)) // 8 * 8)
    else:
        tile_n = 256
        c_tile = max(128, (block_budget // (tile_n * itemsize)) // 128 * 128)
    if tile_n >= n:
        tile_n = n
    if c_tile >= c:
        c_tile = c
    return tile_n, c_tile


def ranking_loss(logit, target, tile_n=None, c_tile=None):
    """logit: [N, C] float, target: [N] int -> scalar float32 loss."""
    n, c = logit.shape
    itemsize = jnp.dtype(logit.dtype).itemsize

    auto_tn, auto_ct = _choose_tiles(n, c, itemsize)
    if tile_n is None:
        tile_n = auto_tn
    else:
        tile_n = n if tile_n >= n else max(8, (tile_n // 8) * 8)
    if c_tile is None:
        c_tile = auto_ct
    else:
        c_tile = c if c_tile >= c else max(128, (c_tile // 128) * 128)

    num_row_tiles = pl.cdiv(n, tile_n)
    num_col_tiles = pl.cdiv(c, c_tile)
    needs_col_mask = (c % c_tile) != 0 if c_tile != c else False

    # Keep bf16 inputs in bf16 through the [T, C] work on bf16-VPU chips.
    if logit.dtype == jnp.bfloat16 and _has_bf16_valu():
        compute_dtype = jnp.bfloat16
    else:
        compute_dtype = jnp.float32

    target_2d = target.astype(jnp.int32).reshape(n, 1)

    # Generation-aware scoped-VMEM limit: always set it so v5e's 16 MiB default
    # cannot bite; never exceed ~3/4 of physical VMEM (v7x has only 64 MiB/TC).
    c_tile_pad = _round_up(c_tile, 128)
    block_bytes = tile_n * c_tile_pad * itemsize
    temp_bytes = 4 * tile_n * c_tile_pad * 4          # [T,C] temporaries, f32 width
    needed = 2 * (block_bytes + tile_n * 4) + temp_bytes + (2 << 20)
    vmem_cap = _vmem_capacity_bytes()
    vmem_limit = int(min(max(needed, 32 << 20), min(48 << 20, (vmem_cap * 3) // 4)))

    kernel = functools.partial(
        _ranking_loss_kernel,
        n_rows=n, n_cols=c, tile_n=tile_n, c_tile=c_tile,
        needs_col_mask=needs_col_mask, compute_dtype=compute_dtype)

    partials = pl.pallas_call(
        kernel,
        out_shape=jax.ShapeDtypeStruct((num_row_tiles, 1), jnp.float32),
        grid=(num_row_tiles, num_col_tiles),
        in_specs=[
            pl.BlockSpec((tile_n, c_tile), lambda i, j: (i, j)),
            pl.BlockSpec((tile_n, 1), lambda i, j: (i, 0)),
        ],
        out_specs=pl.BlockSpec((1, 1), lambda i, j: (i, 0),
                               memory_space=pltpu.MemorySpace.SMEM),
        scratch_shapes=[
            pltpu.VMEM((tile_n, 1), jnp.float32),   # running target-logit sum
            pltpu.VMEM((tile_n, 1), jnp.float32),   # running max excl. target
        ],
        compiler_params=pltpu.CompilerParams(
            dimension_semantics=("parallel", "arbitrary"),
            vmem_limit_bytes=vmem_limit,
        ),
    )(logit, target_2d)

    return jnp.sum(partials)


def ranking_loss_ref(logit, target):
    """Pure-JAX reference (mirrors the PyTorch forward)."""
    n, c = logit.shape
    rows = jnp.arange(n)
    lf = logit.astype(jnp.float32)
    target_logit = lf[rows, target]
    order = jnp.argsort(-lf, axis=1)
    top1_idx = order[:, 0]
    top1_val = lf[rows, order[:, 0]]
    top2_val = lf[rows, order[:, 1]]
    pred_f = jnp.where(top1_idx == target, top2_val, top1_val)
    part1 = (jnp.log(1.0 + jnp.exp(GAMMA * (M_POS - target_logit)))
             + jnp.log(1.0 + jnp.exp(GAMMA * (-M_NEG + pred_f))))
    return jnp.sum(part1)


if __name__ == "__main__":
    key = jax.random.PRNGKey(0)
    keys = jax.random.split(key, 8)

    # 1) Small shape consistent with the module: batch of 8 rows, 16 classes.
    N, C = 8, 16
    logit = jax.random.normal(keys[0], (N, C), dtype=jnp.float32)
    target = jax.random.randint(keys[1], (N,), 0, C, dtype=jnp.int32)
    loss = jax.block_until_ready(ranking_loss(logit, target))
    ref = ranking_loss_ref(logit, target)
    assert jnp.allclose(loss, ref, rtol=1e-5, atol=1e-5), (loss, ref)

    # 2) Multi row-tile path with a partial last tile (row masking + parallel axis).
    N2, C2 = 300, 128
    logit2 = jax.random.normal(keys[2], (N2, C2), dtype=jnp.float32)
    target2 = jax.random.randint(keys[3], (N2,), 0, C2, dtype=jnp.int32)
    loss2 = jax.block_until_ready(ranking_loss(logit2, target2, tile_n=128))
    ref2 = ranking_loss_ref(logit2, target2)
    assert jnp.allclose(loss2, ref2, rtol=1e-4, atol=1e-4), (loss2, ref2)

    # 3) C-tiled ("arbitrary") path with a padded last class chunk (col masking).
    N3, C3 = 64, 320
    logit3 = jax.random.normal(keys[4], (N3, C3), dtype=jnp.float32)
    target3 = jax.random.randint(keys[5], (N3,), 0, C3, dtype=jnp.int32)
    loss3 = jax.block_until_ready(ranking_loss(logit3, target3, tile_n=32, c_tile=128))
    ref3 = ranking_loss_ref(logit3, target3)
    assert jnp.allclose(loss3, ref3, rtol=1e-4, atol=1e-4), (loss3, ref3)

    # 4) bf16 input: packed bf16 [T,C] compute on v6e/v7x, f32 upcast on v5e.
    N4, C4 = 128, 256
    logit4 = jax.random.normal(keys[6], (N4, C4), dtype=jnp.float32).astype(jnp.bfloat16)
    target4 = jax.random.randint(keys[7], (N4,), 0, C4, dtype=jnp.int32)
    loss4 = jax.block_until_ready(ranking_loss(logit4, target4))
    ref4 = ranking_loss_ref(logit4, target4)
    assert jnp.allclose(loss4, ref4, rtol=1e-3, atol=1e-3), (loss4, ref4)

    print("KERNEL_OK")
</pallas_src>

<mosaic_0001>
module attributes {stable_mosaic.version = 11 : i64} {
  func.func @_ranking_loss_kernel(%arg0: i32, %arg1: i32, %arg2: memref<8x16xf32, #tpu.memory_space<vmem>>, %arg3: memref<8x1xi32, #tpu.memory_space<vmem>>, %arg4: memref<1x1xf32, #tpu.memory_space<smem>>, %arg5: memref<8x1xf32, #tpu.memory_space<vmem>>, %arg6: memref<8x1xf32, #tpu.memory_space<vmem>>) attributes {dimension_semantics = [#tpu.dimension_semantics<parallel>, #tpu.dimension_semantics<arbitrary>], iteration_bounds = array<i64: 1, 1>, scalar_prefetch = 0 : i64, scratch_operands = 2 : i64, tpu.core_type = #tpu.core_type<tc>, window_params = [{transform_indices = @transform_0, window_bounds = array<i64: 8, 16>}, {transform_indices = @transform_1, window_bounds = array<i64: 8, 1>}, {transform_indices = @transform_2, window_bounds = array<i64: 1, 1>}]} {
    %c0_i32 = arith.constant 0 : i32
    %0 = arith.cmpi eq, %arg1, %c0_i32 : i32
    %1 = arith.extui %0 : i1 to i32
    %c0_i32_0 = arith.constant 0 : i32
    %2 = arith.cmpi ne, %1, %c0_i32_0 : i32
    scf.if %2 {
      %cst_17 = arith.constant 0.000000e+00 : f32
      %28 = vector.broadcast %cst_17 : f32 to vector<8x1xf32>
      %c0_18 = arith.constant 0 : index
      %c0_19 = arith.constant 0 : index
      %29 = vector.load %arg5[%c0_18, %c0_19] : memref<8x1xf32, #tpu.memory_space<vmem>>, vector<8x1xf32>
      tpu.vector_store %arg5[%c0_18, %c0_19], %28 {strides = array<i32>} : memref<8x1xf32, #tpu.memory_space<vmem>>, vector<8x1xf32>,
      %cst_20 = arith.constant 0xFF800000 : f32
      %30 = vector.broadcast %cst_20 : f32 to vector<8x1xf32>
      %c0_21 = arith.constant 0 : index
      %c0_22 = arith.constant 0 : index
      %31 = vector.load %arg6[%c0_21, %c0_22] : memref<8x1xf32, #tpu.memory_space<vmem>>, vector<8x1xf32>
      tpu.vector_store %arg6[%c0_21, %c0_22], %30 {strides = array<i32>} : memref<8x1xf32, #tpu.memory_space<vmem>>, vector<8x1xf32>,
    } else {
    }
    %c0 = arith.constant 0 : index
    %c0_1 = arith.constant 0 : index
    %3 = vector.load %arg2[%c0, %c0_1] : memref<8x16xf32, #tpu.memory_space<vmem>>, vector<8x16xf32>
    %c0_2 = arith.constant 0 : index
    %c0_3 = arith.constant 0 : index
    %4 = vector.load %arg3[%c0_2, %c0_3] : memref<8x1xi32, #tpu.memory_space<vmem>>, vector<8x1xi32>
    %c16_i32 = arith.constant 16 : i32
    %5 = arith.muli %arg1, %c16_i32 : i32
    %6 = tpu.iota {dimensions = array<i32: 1>} : vector<8x16xi32>
    %7 = vector.broadcast %5 : i32 to vector<8x16xi32>
    %8 = arith.addi %7, %6 : vector<8x16xi32>
    %9 = vector.broadcast %4 : vector<8x1xi32> to vector<8x16xi32>
    %10 = arith.cmpi eq, %8, %9 : vector<8x16xi32>
    %cst = arith.constant 0.000000e+00 : f32
    %11 = vector.broadcast %cst : f32 to vector<8x16xf32>
    %12 = arith.select %10, %3, %11 : vector<8x16xi1>, vector<8x16xf32>
    %cst_4 = arith.constant dense<0.000000e+00> : vector<8xf32>
    %13 = vector.multi_reduction <add>, %12, %cst_4 [1] : vector<8x16xf32> to vector<8xf32>
    %14 = vector.shape_cast %13 : vector<8xf32> to vector<8x1xf32>
    %cst_5 = arith.constant 0xFF800000 : f32
    %15 = vector.broadcast %cst_5 : f32 to vector<8x16xf32>
    %16 = arith.select %10, %15, %3 : vector<8x16xi1>, vector<8x16xf32>
    %cst_6 = arith.constant dense<0xFF800000> : vector<8xf32>
    %17 = vector.multi_reduction <maximumf>, %16, %cst_6 [1] : vector<8x16xf32> to vector<8xf32>
    %18 = vector.shape_cast %17 : vector<8xf32> to vector<8x1xf32>
    %c0_7 = arith.constant 0 : index
    %c0_8 = arith.constant 0 : index
    %19 = vector.load %arg5[%c0_7, %c0_8] : memref<8x1xf32, #tpu.memory_space<vmem>>, vector<8x1xf32>
    %20 = arith.addf %19, %14 : vector<8x1xf32>
    %c0_9 = arith.constant 0 : index
    %c0_10 = arith.constant 0 : index
    %21 = vector.load %arg5[%c0_9, %c0_10] : memref<8x1xf32, #tpu.memory_space<vmem>>, vector<8x1xf32>
    tpu.vector_store %arg5[%c0_9, %c0_10], %20 {strides = array<i32>} : memref<8x1xf32, #tpu.memory_space<vmem>>, vector<8x1xf32>,
    %c0_11 = arith.constant 0 : index
    %c0_12 = arith.constant 0 : index
    %22 = vector.load %arg6[%c0_11, %c0_12] : memref<8x1xf32, #tpu.memory_space<vmem>>, vector<8x1xf32>
    %23 = arith.maximumf %22, %18 : vector<8x1xf32>
    %c0_13 = arith.constant 0 : index
    %c0_14 = arith.constant 0 : index
    %24 = vector.load %arg6[%c0_13, %c0_14] : memref<8x1xf32, #tpu.memory_space<vmem>>, vector<8x1xf32>
    tpu.vector_store %arg6[%c0_13, %c0_14], %23 {strides = array<i32>} : memref<8x1xf32, #tpu.memory_space<vmem>>, vector<8x1xf32>,
    %c0_i32_15 = arith.constant 0 : i32
    %25 = arith.cmpi eq, %arg1, %c0_i32_15 : i32
    %26 = arith.extui %25 : i1 to i32
    %c0_i32_16 = arith.constant 0 : i32
    %27 = arith.cmpi ne, %26, %c0_i32_16 : i32
    scf.if %27 {
      %c0_17 = arith.constant 0 : index
      %c0_18 = arith.constant 0 : index
      %28 = vector.load %arg5[%c0_17, %c0_18] : memref<8x1xf32, #tpu.memory_space<vmem>>, vector<8x1xf32>
      %c0_19 = arith.constant 0 : index
      %c0_20 = arith.constant 0 : index
      %29 = vector.load %arg6[%c0_19, %c0_20] : memref<8x1xf32, #tpu.memory_space<vmem>>, vector<8x1xf32>
      %cst_21 = arith.constant 1.000000e+00 : f32
      %30 = vector.broadcast %cst_21 : f32 to vector<8x1xf32>
      %31 = arith.subf %30, %28 : vector<8x1xf32>
      %cst_22 = arith.constant 2.000000e+00 : f32
      %32 = vector.broadcast %cst_22 : f32 to vector<8x1xf32>
      %33 = arith.mulf %32, %31 : vector<8x1xf32>
      %cst_23 = arith.constant 0.000000e+00 : f32
      %34 = vector.broadcast %cst_23 : f32 to vector<8x1xf32>
      %35 = arith.maximumf %33, %34 : vector<8x1xf32>
      %36 = math.absf %33 : vector<8x1xf32>
      %cst_24 = arith.constant 0.000000e+00 : f32
      %37 = vector.broadcast %cst_24 : f32 to vector<8x1xf32>
      %38 = arith.subf %37, %36 : vector<8x1xf32>
      %39 = math.exp %38 : vector<8x1xf32>
      %cst_25 = arith.constant 1.000000e+00 : f32
      %40 = vector.broadcast %cst_25 : f32 to vector<8x1xf32>
      %41 = arith.addf %40, %39 : vector<8x1xf32>
      %42 = math.log %41 : vector<8x1xf32>
      %43 = arith.addf %35, %42 : vector<8x1xf32>
      %cst_26 = arith.constant -5.000000e-01 : f32
      %44 = vector.broadcast %cst_26 : f32 to vector<8x1xf32>
      %45 = arith.addf %44, %29 : vector<8x1xf32>
      %cst_27 = arith.constant 2.000000e+00 : f32
      %46 = vector.broadcast %cst_27 : f32 to vector<8x1xf32>
      %47 = arith.mulf %46, %45 : vector<8x1xf32>
      %cst_28 = arith.constant 0.000000e+00 : f32
      %48 = vector.broadcast %cst_28 : f32 to vector<8x1xf32>
      %49 = arith.maximumf %47, %48 : vector<8x1xf32>
      %50 = math.absf %47 : vector<8x1xf32>
      %cst_29 = arith.constant 0.000000e+00 : f32
      %51 = vector.broadcast %cst_29 : f32 to vector<8x1xf32>
      %52 = arith.subf %51, %50 : vector<8x1xf32>
      %53 = math.exp %52 : vector<8x1xf32>
      %cst_30 = arith.constant 1.000000e+00 : f32
      %54 = vector.broadcast %cst_30 : f32 to vector<8x1xf32>
      %55 = arith.addf %54, %53 : vector<8x1xf32>
      %56 = math.log %55 : vector<8x1xf32>
      %57 = arith.addf %49, %56 : vector<8x1xf32>
      %58 = arith.addf %43, %57 : vector<8x1xf32>
      %c8_i32 = arith.constant 8 : i32
      %59 = arith.muli %arg0, %c8_i32 : i32
      %60 = tpu.iota {dimensions = array<i32: 0>} : vector<8x1xi32>
      %61 = vector.broadcast %59 : i32 to vector<8x1xi32>
      %62 = arith.addi %61, %60 : vector<8x1xi32>
      %c8_i32_31 = arith.constant 8 : i32
      %63 = vector.broadcast %c8_i32_31 : i32 to vector<8x1xi32>
      %64 = arith.cmpi slt, %62, %63 : vector<8x1xi32>
      %cst_32 = arith.constant 0.000000e+00 : f32
      %65 = vector.broadcast %cst_32 : f32 to vector<8x1xf32>
      %66 = arith.select %64, %58, %65 : vector<8x1xi1>, vector<8x1xf32>
      %67 = vector.shape_cast %66 : vector<8x1xf32> to vector<1x8x1xf32>
      %cst_33 = arith.constant dense<0.000000e+00> : vector<1xf32>
      %68 = vector.multi_reduction <add>, %67, %cst_33 [1, 2] : vector<1x8x1xf32> to vector<1xf32>
      %69 = vector.shape_cast %68 : vector<1xf32> to vector<1x1x1xf32>
      %70 = vector.extract %69[0, 0, 0] : f32 from vector<1x1x1xf32>
      %c0_34 = arith.constant 0 : index
      %c0_35 = arith.constant 0 : index
      %71 = memref.load %arg4[%c0_34, %c0_35] : memref<1x1xf32, #tpu.memory_space<smem>>
      memref.store %70, %arg4[%c0_34, %c0_35] : memref<1x1xf32, #tpu.memory_space<smem>>
    } else {
    }
    return
  }
  func.func @transform_0(%arg0: i32, %arg1: i32) -> (i32, i32) {
    %c0_i32 = arith.constant 0 : i32
    return %arg0, %arg1 : i32, i32
  }
  func.func @transform_1(%arg0: i32, %arg1: i32) -> (i32, i32) {
    %c0_i32 = arith.constant 0 : i32
    %c0_i32_0 = arith.constant 0 : i32
    return %arg0, %c0_i32 : i32, i32
  }
  func.func @transform_2(%arg0: i32, %arg1: i32) -> (i32, i32) {
    %c0_i32 = arith.constant 0 : i32
    %c0_i32_0 = arith.constant 0 : i32
    return %arg0, %c0_i32 : i32, i32
  }
}

</mosaic_0001>

<bundles_post_ra>
// kernel: tpu_custom_call.1
= control target key start
LH: loop header
LB: loop body
LE: loop exit
PB: predicated region body
PF: predicated region fallthrough
CT: control target
= control target key end

     0   :  { %s175_s0 = inlined_call_operand.vmem [shape: f32[8,16], index: 0, kind: input, shape index: {}]   ;;  %s176_s1 = inlined_call_operand.vmem [shape: s32[8,1], index: 1, kind: input, shape index: {}]   ;;  %s177_s2 = inlined_call_operand.hbm [shape: f32[1,1], index: 2, kind: output, shape index: {}]  }
   0x1   :  { %v20_v0 = vld [vmem:[%s176_s1] sm:$0xff] }
   0x2   :  { %7 = vsyncpa [#allocation5], 0  ;;  %v133_v1 = vmov 0   ;;  %v22_v2 = vlaneseq  ;;  %v19_v4 = vld [vmem:[%s175_s0] sm:$0xff]  ;;  %vm31_vm0 = vcmask 130048   ;;  %vm16_vm2 = vcmask 7168  }
   0x3   :  { %112 = vset.pattern.permute.xlu0 %v133_v1  ;;  %v134_v10 = vmov -inf   ;;  %v135_v11 = vmov 0.0   ;;  %s121_s14 = scalar_lea.hbm %s177_s2, 16 }
   0x4   :  { %27 = vperm.xlu0 %112, %v20_v0   ;;  %v23_v3 = vand.u32 127, %v22_v2  ;;  %18 = vst.msk [vmem:[#allocation3] sm:$0xff] %vm16_vm2, %v134_v10  ;;  %17 = vst.msk [vmem:[#allocation2] sm:$0xff] %vm16_vm2, %v135_v11  ;;  %p122_p0 = scmp.ne.s32.totalorder %s177_s2, %s121_s14  ;;  %p125_p1 = scmp.lt.u32.totalorder %s121_s14, %s177_s2 }
   0x6   :  { %p127_p2 = pnand %p125_p1, %p122_p0 }
   0xb   :  { %v43_v12 = vld [vmem:[#allocation3] sm:$0xff]  ;;  %v39_v13 = vld [vmem:[#allocation2] sm:$0xff] }
  0x83   :  { %v28_v5 = vpop.permute.xlu0 %27 }
  0x84   :  { %vm29_vm1 = vcmp.eq.s32.totalorder %v23_v3, %v28_v5 }
  0x85   :  { %v35_v6 = vsel %vm29_vm1, -inf, %v19_v4  ;;  %v30_v7 = vsel %vm29_vm1, %v19_v4, 0.0 }
  0x86   :  { %v36_v8 = vsel %vm31_vm0, %v35_v6, -inf  ;;  %v32_v9 = vsel %vm31_vm0, %v30_v7, 0.0 }
  0x87   :  { %37 = vmax.xlane.f32.xlu1 %v36_v8  ;;  %33 = vadd.xlane.f32.xlu0 %v32_v9 }
 0x114   :  { %v38_v14 = vpop.xlane.xlu1 %37  ;;  %v34_v15 = vpop.xlane.xlu0 %33 }
 0x115   :  { %v44_v16 = vmax.f32 %v43_v12, %v38_v14  ;;  %v40_v17 = vadd.f32 %v39_v13, %v34_v15 }
 0x117   :  { %45 = vst.msk [vmem:[#allocation3] sm:$0xff] %vm16_vm2, %v44_v16  ;;  %42 = vst.msk [vmem:[#allocation2] sm:$0xff] %vm16_vm2, %v40_v17 }
 0x11e   :  { %v49_v18 = vld [vmem:[#allocation2] sm:$0xff]  ;;  %v50_v19 = vld [vmem:[#allocation3] sm:$0xff] }
 0x11f   :  { %v51_v20 = vsub.f32 1.0, %v49_v18  ;;  %v62_v21 = vadd.f32 -0.5, %v50_v19 }
 0x121   :  { %v52_v22 = vmul.f32 2.0, %v51_v20  ;;  %v63_v23 = vmul.f32 2.0, %v62_v21 }
 0x123   :  { %v54_v24 = vand.u32 2147483647, %v52_v22  ;;  %v65_v25 = vand.u32 2147483647, %v63_v23  ;;  %v53_v36 = vmax.f32 %v52_v22, 0.0  ;;  %v64_v38 = vmax.f32 %v63_v23, 0.0 }
 0x125   :  { %v55_v26 = vsub.f32 0.0, %v54_v24  ;;  %v66_v27 = vsub.f32 0.0, %v65_v25 }
 0x127   :  { %v56_v28 = vmul.f32 1.442695, %v55_v26  ;;  %v67_v29 = vmul.f32 1.442695, %v66_v27 }
 0x129   :  { %113 = vpow2.f32 %v56_v28 }
 0x12a   :  { %115 = vpow2.f32 %v67_v29 }
 0x133   :  { %v114_v30 = vpop.eup %113 }
 0x134   :  { %v116_v31 = vpop.eup %115  ;;  %v58_v32 = vadd.f32 1.0, %v114_v30 }
 0x135   :  { %v69_v33 = vadd.f32 1.0, %v116_v31 }
 0x136   :  { %117 = vlog2.f32 %v58_v32 }
 0x137   :  { %119 = vlog2.f32 %v69_v33 }
 0x140   :  { %v118_v34 = vpop.eup %117 }
 0x141   :  { %v120_v35 = vpop.eup %119  ;;  %v60_v37 = vmul.f32 0.6931472, %v118_v34 }
 0x142   :  { %v71_v39 = vmul.f32 0.6931472, %v120_v35 }
 0x143   :  { %v61_v40 = vadd.f32 %v60_v37, %v53_v36 }
 0x144   :  { %v72_v41 = vadd.f32 %v71_v39, %v64_v38 }
 0x146   :  { %v73_v42 = vadd.f32 %v72_v41, %v61_v40 }
 0x148   :  { %v81_v43 = vsel %vm16_vm2, %v73_v42, 0.0 }
 0x149   :  { %82 = vadd.xlane.f32.xlu1 %v81_v43 }
 0x1d6   :  { %v83_v44 = vpop.xlane.xlu1 %82 }
 0x1d7   :  { %v84_v45 = vrot.slane %v83_v44, 4 }
 0x1d9   :  { %v85_v46 = vadd.f32 %v84_v45, %v83_v44 }
 0x1db   :  { %v86_v47 = vrot.slane %v85_v46, 2 }
 0x1dd   :  { %v87_v48 = vadd.f32 %v86_v47, %v85_v46 }
 0x1df   :  { %v88_v49 = vrot.slane %v87_v48, 1 }
 0x1e1   :  { %v89_v50 = vadd.f32 %v88_v49, %v87_v48 }
 0x1e3   :  { %106 = vpush %v89_v50 }
 0x214   :  { %s107_s0 = spop %106 }
 0x215   :  { %92 = sst [smem:[#allocation4]] %s107_s0 }
 0x216   :  { %130 = shalt.err (!%p127_p2)
}
 0x217   :  { %s136_s19 = smov [#allocation4]  }
 0x218   :  { %100 = dma.smem_to_hbm %s136_s19, 16, %s177_s2, [#allocation5]  }
 0x219   :  { %131 = dma.done.wait [#allocation5], 16  }
 0x21a   :  { %132 = vsyncadd [#allocation5], 4294967280 }
 0x21b   :  { %104 = sfence }
 0x21c   :  { %105 = vsyncpa [#allocation5], 1 }

</bundles_post_ra>
